<compile_context>
chip_gen: v7x
topology: tpu7x:2x2x1
jax: 0.10.0
libtpu: 0.0.40
codegen_flags: <defaults>
</compile_context>

<pallas_src>
import jax
import jax.numpy as jnp
from jax.experimental import pallas as pl
from jax.experimental.pallas import tpu as pltpu


def _round_up(x, m):
    return (x + m - 1) // m * m


# ---------------------------------------------------------------------------
# Pallas kernels
# ---------------------------------------------------------------------------
def _conv_relu_pool_kernel(p_ref, w_ref, b_ref, o_ref):
    """Fused conv-GEMM + bias + ReLU + MaxPool2d(2,2).

    p_ref: (4, K, TM)  im2col patches; leading axis = the 4 corners of each
                       2x2 pooling window; TM = tile of pooled output pixels.
    w_ref: (OC, K)     conv weight reshaped (oc, ic*kh*kw).
    b_ref: (OC, 1)     bias.
    o_ref: (OC, TM)    pooled output (lane-dense: pixels on lanes).
    """
    w = w_ref[...]
    b = b_ref[...]
    acc = None
    for corner in range(4):                     # static unroll: 4 MXU matmuls
        y = jnp.dot(w, p_ref[corner], preferred_element_type=jnp.float32) + b
        y = jnp.maximum(y, 0.0)                               # ReLU
        acc = y if acc is None else jnp.maximum(acc, y)       # 2x2 max-pool
    o_ref[...] = acc.astype(o_ref.dtype)


def _mlp_kernel(x_ref, w1_ref, b1_ref, w2_ref, b2_ref, w3_ref, b3_ref, o_ref):
    """Fused fc1 -> ReLU -> fc2 -> ReLU -> fc3; intermediates stay in VMEM."""
    h = jnp.dot(x_ref[...], w1_ref[...], preferred_element_type=jnp.float32)
    h = jnp.maximum(h + b1_ref[...], 0.0)
    h = jnp.dot(h, w2_ref[...], preferred_element_type=jnp.float32)
    h = jnp.maximum(h + b2_ref[...], 0.0)
    o = jnp.dot(h, w3_ref[...], preferred_element_type=jnp.float32) + b3_ref[...]
    o_ref[...] = o.astype(o_ref.dtype)


# ---------------------------------------------------------------------------
# Wrappers (XLA glue = pure data rearrangement only)
# ---------------------------------------------------------------------------
def _corner_patches(x_cnhw, kh, kw):
    """im2col + pooling-corner split.

    x_cnhw: (C, N, H, W) -> (4, K, N*PH*PW), K = C*KH*KW (k order: ic, kh, kw,
    matching weight.reshape(OC, IC*KH*KW)); corner = dy*2+dx; pooled-pixel
    index m = ((n*PH + ph)*PW + pw).
    """
    c, n, h, w = x_cnhw.shape
    oh, ow = h - kh + 1, w - kw + 1
    assert oh % 2 == 0 and ow % 2 == 0, "MaxPool2d(2,2) requires even conv output"
    ph, pw = oh // 2, ow // 2
    cols = []
    for i in range(kh):
        for j in range(kw):
            cols.append(x_cnhw[:, :, i:i + oh, j:j + ow])      # (C, N, OH, OW)
    p = jnp.stack(cols, axis=1)                                # (C, KH*KW, N, OH, OW)
    k = c * kh * kw
    p = p.reshape(k, n, ph, 2, pw, 2)                          # split 2x2 windows
    p = p.transpose(3, 5, 0, 1, 2, 4)                          # (dy, dx, K, N, PH, PW)
    return p.reshape(4, k, n * ph * pw), ph, pw


def conv_relu_pool(x_cnhw, w2d, bias_col, kh, kw, *, tile_m=1024):
    """Conv2d(valid, stride 1) + ReLU + MaxPool2d(2,2), fused in one kernel.

    x_cnhw: (C, N, H, W); w2d: (OC, C*KH*KW); bias_col: (OC, 1).
    Returns channel-first pooled activations (OC, N, PH, PW).
    """
    c, n, h, w = x_cnhw.shape
    oc, k = w2d.shape
    p4, ph, pw = _corner_patches(x_cnhw, kh, kw)
    m = n * ph * pw
    tm = min(tile_m, _round_up(m, 128))          # lane-dense, VMEM-sized tiles
    m_pad = _round_up(m, tm)
    if m_pad != m:
        p4 = jnp.pad(p4, ((0, 0), (0, 0), (0, m_pad - m)))
    out = pl.pallas_call(
        _conv_relu_pool_kernel,
        out_shape=jax.ShapeDtypeStruct((oc, m_pad), jnp.float32),
        grid=(m_pad // tm,),
        in_specs=[
            pl.BlockSpec((4, k, tm), lambda i: (0, 0, i)),
            pl.BlockSpec((oc, k), lambda i: (0, 0)),
            pl.BlockSpec((oc, 1), lambda i: (0, 0)),
        ],
        out_specs=pl.BlockSpec((oc, tm), lambda i: (0, i)),
        compiler_params=pltpu.CompilerParams(dimension_semantics=("parallel",)),
    )(p4, w2d, bias_col)
    return out[:, :m].reshape(oc, n, ph, pw)


def mlp_head(x, w1t, b1, w2t, b2, w3t, b3, *, tile_m=512):
    """Fused fc1/fc2/fc3 head. x: (M, 256) -> (M, 10); weights pre-transposed."""
    m, k = x.shape
    n_out = w3t.shape[1]
    tm = min(tile_m, _round_up(m, 8))
    m_pad = _round_up(m, tm)
    if m_pad != m:
        x = jnp.pad(x, ((0, m_pad - m), (0, 0)))
    out = pl.pallas_call(
        _mlp_kernel,
        out_shape=jax.ShapeDtypeStruct((m_pad, n_out), jnp.float32),
        grid=(m_pad // tm,),
        in_specs=[
            pl.BlockSpec((tm, k), lambda i: (i, 0)),
            pl.BlockSpec(w1t.shape, lambda i: (0, 0)),
            pl.BlockSpec(b1.shape, lambda i: (0, 0)),
            pl.BlockSpec(w2t.shape, lambda i: (0, 0)),
            pl.BlockSpec(b2.shape, lambda i: (0, 0)),
            pl.BlockSpec(w3t.shape, lambda i: (0, 0)),
            pl.BlockSpec(b3.shape, lambda i: (0, 0)),
        ],
        out_specs=pl.BlockSpec((tm, n_out), lambda i: (i, 0)),
        compiler_params=pltpu.CompilerParams(dimension_semantics=("parallel",)),
    )(x, w1t, b1, w2t, b2, w3t, b3)
    return out[:m]


# ---------------------------------------------------------------------------
# Parameters (PyTorch-like uniform init, pre-packed in kernel-ready layouts)
# ---------------------------------------------------------------------------
def _uniform(key, shape, fan_in):
    bound = 1.0 / jnp.sqrt(jnp.float32(fan_in))
    return jax.random.uniform(key, shape, jnp.float32, -bound, bound)


def init_params(key):
    ks = jax.random.split(key, 10)
    conv1_w = _uniform(ks[0], (6, 1, 5, 5), 25)
    conv2_w = _uniform(ks[2], (16, 6, 5, 5), 150)
    fc1_w = _uniform(ks[4], (120, 256), 256)
    fc2_w = _uniform(ks[6], (84, 120), 120)
    fc3_w = _uniform(ks[8], (10, 84), 84)
    # All reshapes / transposes hoisted here, out of the forward path.
    return {
        "conv1_w2d": conv1_w.reshape(6, 25),            # (OC, IC*KH*KW)
        "conv1_b": _uniform(ks[1], (6, 1), 25),
        "conv2_w2d": conv2_w.reshape(16, 150),
        "conv2_b": _uniform(ks[3], (16, 1), 150),
        "fc1_wT": fc1_w.T,                              # (256, 120)
        "fc1_b": _uniform(ks[5], (1, 120), 256),
        "fc2_wT": fc2_w.T,                              # (120, 84)
        "fc2_b": _uniform(ks[7], (1, 84), 120),
        "fc3_wT": fc3_w.T,                              # (84, 10)
        "fc3_b": _uniform(ks[9], (1, 10), 84),
    }


# ---------------------------------------------------------------------------
# Forward pass (mirrors Net.forward exactly)
# ---------------------------------------------------------------------------
@jax.jit
def net_forward(params, x):
    # x: (N, 1, 28, 28) NCHW float32
    n = x.shape[0]
    x = x.transpose(1, 0, 2, 3)                                          # CNHW
    x = conv_relu_pool(x, params["conv1_w2d"], params["conv1_b"], 5, 5)  # (6, N, 12, 12)
    x = conv_relu_pool(x, params["conv2_w2d"], params["conv2_b"], 5, 5)  # (16, N, 4, 4)
    # flatten in torch's .view(-1, 16*4*4) order: (c, h, w)
    x = x.transpose(1, 0, 2, 3).reshape(n, 16 * 4 * 4)                   # (N, 256)
    return mlp_head(x, params["fc1_wT"], params["fc1_b"],
                    params["fc2_wT"], params["fc2_b"],
                    params["fc3_wT"], params["fc3_b"])                   # (N, 10)


if __name__ == "__main__":
    key = jax.random.PRNGKey(0)
    pkey, xkey = jax.random.split(key)
    params = init_params(pkey)
    # Net.forward implies 28x28 single-channel input (FashionMNIST-style).
    x = jax.random.normal(xkey, (2, 1, 28, 28), dtype=jnp.float32)
    out = net_forward(params, x)
    out = jax.block_until_ready(out)
    assert out.shape == (2, 10), out.shape
    assert jnp.all(jnp.isfinite(out))
    print("KERNEL_OK")
</pallas_src>

<mosaic_0001>
module attributes {stable_mosaic.version = 11 : i64} {
  func.func @_conv_relu_pool_kernel(%arg0: i32, %arg1: memref<4x25x384xf32, #tpu.memory_space<vmem>>, %arg2: memref<6x25xf32, #tpu.memory_space<vmem>>, %arg3: memref<6x1xf32, #tpu.memory_space<vmem>>, %arg4: memref<6x384xf32, #tpu.memory_space<vmem>>) attributes {dimension_semantics = [#tpu.dimension_semantics<parallel>], iteration_bounds = array<i64: 1>, scalar_prefetch = 0 : i64, scratch_operands = 0 : i64, tpu.core_type = #tpu.core_type<tc>, window_params = [{transform_indices = @transform_0, window_bounds = array<i64: 4, 25, 384>}, {pipeline_mode = #tpu.pipeline_mode<synchronous>, transform_indices = @transform_1, window_bounds = array<i64: 6, 25>}, {pipeline_mode = #tpu.pipeline_mode<synchronous>, transform_indices = @transform_2, window_bounds = array<i64: 6, 1>}, {transform_indices = @transform_3, window_bounds = array<i64: 6, 384>}]} {
    %c0 = arith.constant 0 : index
    %c0_0 = arith.constant 0 : index
    %0 = vector.load %arg2[%c0, %c0_0] : memref<6x25xf32, #tpu.memory_space<vmem>>, vector<6x25xf32>
    %c0_1 = arith.constant 0 : index
    %c0_2 = arith.constant 0 : index
    %1 = vector.load %arg3[%c0_1, %c0_2] : memref<6x1xf32, #tpu.memory_space<vmem>>, vector<6x1xf32>
    %c0_3 = arith.constant 0 : index
    %c0_4 = arith.constant 0 : index
    %c0_5 = arith.constant 0 : index
    %2 = vector.load %arg1[%c0_3, %c0_4, %c0_5] : memref<4x25x384xf32, #tpu.memory_space<vmem>>, vector<1x25x384xf32>
    %3 = vector.shape_cast %2 : vector<1x25x384xf32> to vector<25x384xf32>
    %cst = arith.constant dense<0.000000e+00> : vector<6x384xf32>
    %4 = tpu.matmul %0, %3, %cst {dimension_numbers = #tpu.dot_dimension_numbers<[1], [0], [0], [1], [0, 0, 1, 1], [], []>} : vector<6x25xf32>, vector<25x384xf32>, vector<6x384xf32> -> vector<6x384xf32>
    %5 = vector.broadcast %1 : vector<6x1xf32> to vector<6x384xf32>
    %6 = arith.addf %4, %5 : vector<6x384xf32>
    %cst_6 = arith.constant 0.000000e+00 : f32
    %7 = vector.broadcast %cst_6 : f32 to vector<6x384xf32>
    %8 = arith.maximumf %6, %7 : vector<6x384xf32>
    %c1 = arith.constant 1 : index
    %c0_7 = arith.constant 0 : index
    %c0_8 = arith.constant 0 : index
    %9 = vector.load %arg1[%c1, %c0_7, %c0_8] : memref<4x25x384xf32, #tpu.memory_space<vmem>>, vector<1x25x384xf32>
    %10 = vector.shape_cast %9 : vector<1x25x384xf32> to vector<25x384xf32>
    %cst_9 = arith.constant dense<0.000000e+00> : vector<6x384xf32>
    %11 = tpu.matmul %0, %10, %cst_9 {dimension_numbers = #tpu.dot_dimension_numbers<[1], [0], [0], [1], [0, 0, 1, 1], [], []>} : vector<6x25xf32>, vector<25x384xf32>, vector<6x384xf32> -> vector<6x384xf32>
    %12 = vector.broadcast %1 : vector<6x1xf32> to vector<6x384xf32>
    %13 = arith.addf %11, %12 : vector<6x384xf32>
    %cst_10 = arith.constant 0.000000e+00 : f32
    %14 = vector.broadcast %cst_10 : f32 to vector<6x384xf32>
    %15 = arith.maximumf %13, %14 : vector<6x384xf32>
    %16 = arith.maximumf %8, %15 : vector<6x384xf32>
    %c2 = arith.constant 2 : index
    %c0_11 = arith.constant 0 : index
    %c0_12 = arith.constant 0 : index
    %17 = vector.load %arg1[%c2, %c0_11, %c0_12] : memref<4x25x384xf32, #tpu.memory_space<vmem>>, vector<1x25x384xf32>
    %18 = vector.shape_cast %17 : vector<1x25x384xf32> to vector<25x384xf32>
    %cst_13 = arith.constant dense<0.000000e+00> : vector<6x384xf32>
    %19 = tpu.matmul %0, %18, %cst_13 {dimension_numbers = #tpu.dot_dimension_numbers<[1], [0], [0], [1], [0, 0, 1, 1], [], []>} : vector<6x25xf32>, vector<25x384xf32>, vector<6x384xf32> -> vector<6x384xf32>
    %20 = vector.broadcast %1 : vector<6x1xf32> to vector<6x384xf32>
    %21 = arith.addf %19, %20 : vector<6x384xf32>
    %cst_14 = arith.constant 0.000000e+00 : f32
    %22 = vector.broadcast %cst_14 : f32 to vector<6x384xf32>
    %23 = arith.maximumf %21, %22 : vector<6x384xf32>
    %24 = arith.maximumf %16, %23 : vector<6x384xf32>
    %c3 = arith.constant 3 : index
    %c0_15 = arith.constant 0 : index
    %c0_16 = arith.constant 0 : index
    %25 = vector.load %arg1[%c3, %c0_15, %c0_16] : memref<4x25x384xf32, #tpu.memory_space<vmem>>, vector<1x25x384xf32>
    %26 = vector.shape_cast %25 : vector<1x25x384xf32> to vector<25x384xf32>
    %cst_17 = arith.constant dense<0.000000e+00> : vector<6x384xf32>
    %27 = tpu.matmul %0, %26, %cst_17 {dimension_numbers = #tpu.dot_dimension_numbers<[1], [0], [0], [1], [0, 0, 1, 1], [], []>} : vector<6x25xf32>, vector<25x384xf32>, vector<6x384xf32> -> vector<6x384xf32>
    %28 = vector.broadcast %1 : vector<6x1xf32> to vector<6x384xf32>
    %29 = arith.addf %27, %28 : vector<6x384xf32>
    %cst_18 = arith.constant 0.000000e+00 : f32
    %30 = vector.broadcast %cst_18 : f32 to vector<6x384xf32>
    %31 = arith.maximumf %29, %30 : vector<6x384xf32>
    %32 = arith.maximumf %24, %31 : vector<6x384xf32>
    %c0_19 = arith.constant 0 : index
    %c0_20 = arith.constant 0 : index
    %33 = vector.load %arg4[%c0_19, %c0_20] : memref<6x384xf32, #tpu.memory_space<vmem>>, vector<6x384xf32>
    tpu.vector_store %arg4[%c0_19, %c0_20], %32 {strides = array<i32>} : memref<6x384xf32, #tpu.memory_space<vmem>>, vector<6x384xf32>,
    return
  }
  func.func @transform_0(%arg0: i32) -> (i32, i32, i32) {
    %c0_i32 = arith.constant 0 : i32
    %c0_i32_0 = arith.constant 0 : i32
    %c0_i32_1 = arith.constant 0 : i32
    return %c0_i32, %c0_i32_0, %arg0 : i32, i32, i32
  }
  func.func @transform_1(%arg0: i32) -> (i32, i32) {
    %c0_i32 = arith.constant 0 : i32
    %c0_i32_0 = arith.constant 0 : i32
    %c0_i32_1 = arith.constant 0 : i32
    return %c0_i32, %c0_i32_0 : i32, i32
  }
  func.func @transform_2(%arg0: i32) -> (i32, i32) {
    %c0_i32 = arith.constant 0 : i32
    %c0_i32_0 = arith.constant 0 : i32
    %c0_i32_1 = arith.constant 0 : i32
    return %c0_i32, %c0_i32_0 : i32, i32
  }
  func.func @transform_3(%arg0: i32) -> (i32, i32) {
    %c0_i32 = arith.constant 0 : i32
    %c0_i32_0 = arith.constant 0 : i32
    return %c0_i32, %arg0 : i32, i32
  }
}

module attributes {stable_mosaic.version = 11 : i64} {
  func.func @_conv_relu_pool_kernel(%arg0: i32, %arg1: memref<4x150x128xf32, #tpu.memory_space<vmem>>, %arg2: memref<16x150xf32, #tpu.memory_space<vmem>>, %arg3: memref<16x1xf32, #tpu.memory_space<vmem>>, %arg4: memref<16x128xf32, #tpu.memory_space<vmem>>) attributes {dimension_semantics = [#tpu.dimension_semantics<parallel>], iteration_bounds = array<i64: 1>, scalar_prefetch = 0 : i64, scratch_operands = 0 : i64, tpu.core_type = #tpu.core_type<tc>, window_params = [{transform_indices = @transform_0, window_bounds = array<i64: 4, 150, 128>}, {pipeline_mode = #tpu.pipeline_mode<synchronous>, transform_indices = @transform_1, window_bounds = array<i64: 16, 150>}, {pipeline_mode = #tpu.pipeline_mode<synchronous>, transform_indices = @transform_2, window_bounds = array<i64: 16, 1>}, {transform_indices = @transform_3, window_bounds = array<i64: 16, 128>}]} {
    %c0 = arith.constant 0 : index
    %c0_0 = arith.constant 0 : index
    %0 = vector.load %arg2[%c0, %c0_0] : memref<16x150xf32, #tpu.memory_space<vmem>>, vector<16x150xf32>
    %c0_1 = arith.constant 0 : index
    %c0_2 = arith.constant 0 : index
    %1 = vector.load %arg3[%c0_1, %c0_2] : memref<16x1xf32, #tpu.memory_space<vmem>>, vector<16x1xf32>
    %c0_3 = arith.constant 0 : index
    %c0_4 = arith.constant 0 : index
    %c0_5 = arith.constant 0 : index
    %2 = vector.load %arg1[%c0_3, %c0_4, %c0_5] : memref<4x150x128xf32, #tpu.memory_space<vmem>>, vector<1x150x128xf32>
    %3 = vector.shape_cast %2 : vector<1x150x128xf32> to vector<150x128xf32>
    %cst = arith.constant dense<0.000000e+00> : vector<16x128xf32>
    %4 = tpu.matmul %0, %3, %cst {dimension_numbers = #tpu.dot_dimension_numbers<[1], [0], [0], [1], [0, 0, 1, 1], [], []>} : vector<16x150xf32>, vector<150x128xf32>, vector<16x128xf32> -> vector<16x128xf32>
    %5 = vector.broadcast %1 : vector<16x1xf32> to vector<16x128xf32>
    %6 = arith.addf %4, %5 : vector<16x128xf32>
    %cst_6 = arith.constant 0.000000e+00 : f32
    %7 = vector.broadcast %cst_6 : f32 to vector<16x128xf32>
    %8 = arith.maximumf %6, %7 : vector<16x128xf32>
    %c1 = arith.constant 1 : index
    %c0_7 = arith.constant 0 : index
    %c0_8 = arith.constant 0 : index
    %9 = vector.load %arg1[%c1, %c0_7, %c0_8] : memref<4x150x128xf32, #tpu.memory_space<vmem>>, vector<1x150x128xf32>
    %10 = vector.shape_cast %9 : vector<1x150x128xf32> to vector<150x128xf32>
    %cst_9 = arith.constant dense<0.000000e+00> : vector<16x128xf32>
    %11 = tpu.matmul %0, %10, %cst_9 {dimension_numbers = #tpu.dot_dimension_numbers<[1], [0], [0], [1], [0, 0, 1, 1], [], []>} : vector<16x150xf32>, vector<150x128xf32>, vector<16x128xf32> -> vector<16x128xf32>
    %12 = vector.broadcast %1 : vector<16x1xf32> to vector<16x128xf32>
    %13 = arith.addf %11, %12 : vector<16x128xf32>
    %cst_10 = arith.constant 0.000000e+00 : f32
    %14 = vector.broadcast %cst_10 : f32 to vector<16x128xf32>
    %15 = arith.maximumf %13, %14 : vector<16x128xf32>
    %16 = arith.maximumf %8, %15 : vector<16x128xf32>
    %c2 = arith.constant 2 : index
    %c0_11 = arith.constant 0 : index
    %c0_12 = arith.constant 0 : index
    %17 = vector.load %arg1[%c2, %c0_11, %c0_12] : memref<4x150x128xf32, #tpu.memory_space<vmem>>, vector<1x150x128xf32>
    %18 = vector.shape_cast %17 : vector<1x150x128xf32> to vector<150x128xf32>
    %cst_13 = arith.constant dense<0.000000e+00> : vector<16x128xf32>
    %19 = tpu.matmul %0, %18, %cst_13 {dimension_numbers = #tpu.dot_dimension_numbers<[1], [0], [0], [1], [0, 0, 1, 1], [], []>} : vector<16x150xf32>, vector<150x128xf32>, vector<16x128xf32> -> vector<16x128xf32>
    %20 = vector.broadcast %1 : vector<16x1xf32> to vector<16x128xf32>
    %21 = arith.addf %19, %20 : vector<16x128xf32>
    %cst_14 = arith.constant 0.000000e+00 : f32
    %22 = vector.broadcast %cst_14 : f32 to vector<16x128xf32>
    %23 = arith.maximumf %21, %22 : vector<16x128xf32>
    %24 = arith.maximumf %16, %23 : vector<16x128xf32>
    %c3 = arith.constant 3 : index
    %c0_15 = arith.constant 0 : index
    %c0_16 = arith.constant 0 : index
    %25 = vector.load %arg1[%c3, %c0_15, %c0_16] : memref<4x150x128xf32, #tpu.memory_space<vmem>>, vector<1x150x128xf32>
    %26 = vector.shape_cast %25 : vector<1x150x128xf32> to vector<150x128xf32>
    %cst_17 = arith.constant dense<0.000000e+00> : vector<16x128xf32>
    %27 = tpu.matmul %0, %26, %cst_17 {dimension_numbers = #tpu.dot_dimension_numbers<[1], [0], [0], [1], [0, 0, 1, 1], [], []>} : vector<16x150xf32>, vector<150x128xf32>, vector<16x128xf32> -> vector<16x128xf32>
    %28 = vector.broadcast %1 : vector<16x1xf32> to vector<16x128xf32>
    %29 = arith.addf %27, %28 : vector<16x128xf32>
    %cst_18 = arith.constant 0.000000e+00 : f32
    %30 = vector.broadcast %cst_18 : f32 to vector<16x128xf32>
    %31 = arith.maximumf %29, %30 : vector<16x128xf32>
    %32 = arith.maximumf %24, %31 : vector<16x128xf32>
    %c0_19 = arith.constant 0 : index
    %c0_20 = arith.constant 0 : index
    %33 = vector.load %arg4[%c0_19, %c0_20] : memref<16x128xf32, #tpu.memory_space<vmem>>, vector<16x128xf32>
    tpu.vector_store %arg4[%c0_19, %c0_20], %32 {strides = array<i32>} : memref<16x128xf32, #tpu.memory_space<vmem>>, vector<16x128xf32>,
    return
  }
  func.func @transform_0(%arg0: i32) -> (i32, i32, i32) {
    %c0_i32 = arith.constant 0 : i32
    %c0_i32_0 = arith.constant 0 : i32
    %c0_i32_1 = arith.constant 0 : i32
    return %c0_i32, %c0_i32_0, %arg0 : i32, i32, i32
  }
  func.func @transform_1(%arg0: i32) -> (i32, i32) {
    %c0_i32 = arith.constant 0 : i32
    %c0_i32_0 = arith.constant 0 : i32
    %c0_i32_1 = arith.constant 0 : i32
    return %c0_i32, %c0_i32_0 : i32, i32
  }
  func.func @transform_2(%arg0: i32) -> (i32, i32) {
    %c0_i32 = arith.constant 0 : i32
    %c0_i32_0 = arith.constant 0 : i32
    %c0_i32_1 = arith.constant 0 : i32
    return %c0_i32, %c0_i32_0 : i32, i32
  }
  func.func @transform_3(%arg0: i32) -> (i32, i32) {
    %c0_i32 = arith.constant 0 : i32
    %c0_i32_0 = arith.constant 0 : i32
    return %c0_i32, %arg0 : i32, i32
  }
}

module attributes {stable_mosaic.version = 11 : i64} {
  func.func @_mlp_kernel(%arg0: i32, %arg1: memref<8x256xf32, #tpu.memory_space<vmem>>, %arg2: memref<256x120xf32, #tpu.memory_space<vmem>>, %arg3: memref<1x120xf32, #tpu.memory_space<vmem>>, %arg4: memref<120x84xf32, #tpu.memory_space<vmem>>, %arg5: memref<1x84xf32, #tpu.memory_space<vmem>>, %arg6: memref<84x10xf32, #tpu.memory_space<vmem>>, %arg7: memref<1x10xf32, #tpu.memory_space<vmem>>, %arg8: memref<8x10xf32, #tpu.memory_space<vmem>>) attributes {dimension_semantics = [#tpu.dimension_semantics<parallel>], iteration_bounds = array<i64: 1>, scalar_prefetch = 0 : i64, scratch_operands = 0 : i64, tpu.core_type = #tpu.core_type<tc>, window_params = [{transform_indices = @transform_0, window_bounds = array<i64: 8, 256>}, {pipeline_mode = #tpu.pipeline_mode<synchronous>, transform_indices = @transform_1, window_bounds = array<i64: 256, 120>}, {pipeline_mode = #tpu.pipeline_mode<synchronous>, transform_indices = @transform_2, window_bounds = array<i64: 1, 120>}, {pipeline_mode = #tpu.pipeline_mode<synchronous>, transform_indices = @transform_3, window_bounds = array<i64: 120, 84>}, {pipeline_mode = #tpu.pipeline_mode<synchronous>, transform_indices = @transform_4, window_bounds = array<i64: 1, 84>}, {pipeline_mode = #tpu.pipeline_mode<synchronous>, transform_indices = @transform_5, window_bounds = array<i64: 84, 10>}, {pipeline_mode = #tpu.pipeline_mode<synchronous>, transform_indices = @transform_6, window_bounds = array<i64: 1, 10>}, {transform_indices = @transform_7, window_bounds = array<i64: 8, 10>}]} {
    %c0 = arith.constant 0 : index
    %c0_0 = arith.constant 0 : index
    %0 = vector.load %arg1[%c0, %c0_0] : memref<8x256xf32, #tpu.memory_space<vmem>>, vector<8x256xf32>
    %c0_1 = arith.constant 0 : index
    %c0_2 = arith.constant 0 : index
    %1 = vector.load %arg2[%c0_1, %c0_2] : memref<256x120xf32, #tpu.memory_space<vmem>>, vector<256x120xf32>
    %cst = arith.constant dense<0.000000e+00> : vector<8x120xf32>
    %2 = tpu.matmul %0, %1, %cst {dimension_numbers = #tpu.dot_dimension_numbers<[1], [0], [0], [1], [0, 0, 1, 1], [], []>} : vector<8x256xf32>, vector<256x120xf32>, vector<8x120xf32> -> vector<8x120xf32>
    %c0_3 = arith.constant 0 : index
    %c0_4 = arith.constant 0 : index
    %3 = vector.load %arg3[%c0_3, %c0_4] : memref<1x120xf32, #tpu.memory_space<vmem>>, vector<1x120xf32>
    %4 = vector.broadcast %3 : vector<1x120xf32> to vector<8x120xf32>
    %5 = arith.addf %2, %4 : vector<8x120xf32>
    %cst_5 = arith.constant 0.000000e+00 : f32
    %6 = vector.broadcast %cst_5 : f32 to vector<8x120xf32>
    %7 = arith.maximumf %5, %6 : vector<8x120xf32>
    %c0_6 = arith.constant 0 : index
    %c0_7 = arith.constant 0 : index
    %8 = vector.load %arg4[%c0_6, %c0_7] : memref<120x84xf32, #tpu.memory_space<vmem>>, vector<120x84xf32>
    %cst_8 = arith.constant dense<0.000000e+00> : vector<8x84xf32>
    %9 = tpu.matmul %7, %8, %cst_8 {dimension_numbers = #tpu.dot_dimension_numbers<[1], [0], [0], [1], [0, 0, 1, 1], [], []>} : vector<8x120xf32>, vector<120x84xf32>, vector<8x84xf32> -> vector<8x84xf32>
    %c0_9 = arith.constant 0 : index
    %c0_10 = arith.constant 0 : index
    %10 = vector.load %arg5[%c0_9, %c0_10] : memref<1x84xf32, #tpu.memory_space<vmem>>, vector<1x84xf32>
    %11 = vector.broadcast %10 : vector<1x84xf32> to vector<8x84xf32>
    %12 = arith.addf %9, %11 : vector<8x84xf32>
    %cst_11 = arith.constant 0.000000e+00 : f32
    %13 = vector.broadcast %cst_11 : f32 to vector<8x84xf32>
    %14 = arith.maximumf %12, %13 : vector<8x84xf32>
    %c0_12 = arith.constant 0 : index
    %c0_13 = arith.constant 0 : index
    %15 = vector.load %arg6[%c0_12, %c0_13] : memref<84x10xf32, #tpu.memory_space<vmem>>, vector<84x10xf32>
    %cst_14 = arith.constant dense<0.000000e+00> : vector<8x10xf32>
    %16 = tpu.matmul %14, %15, %cst_14 {dimension_numbers = #tpu.dot_dimension_numbers<[1], [0], [0], [1], [0, 0, 1, 1], [], []>} : vector<8x84xf32>, vector<84x10xf32>, vector<8x10xf32> -> vector<8x10xf32>
    %c0_15 = arith.constant 0 : index
    %c0_16 = arith.constant 0 : index
    %17 = vector.load %arg7[%c0_15, %c0_16] : memref<1x10xf32, #tpu.memory_space<vmem>>, vector<1x10xf32>
    %18 = vector.broadcast %17 : vector<1x10xf32> to vector<8x10xf32>
    %19 = arith.addf %16, %18 : vector<8x10xf32>
    %c0_17 = arith.constant 0 : index
    %c0_18 = arith.constant 0 : index
    %20 = vector.load %arg8[%c0_17, %c0_18] : memref<8x10xf32, #tpu.memory_space<vmem>>, vector<8x10xf32>
    tpu.vector_store %arg8[%c0_17, %c0_18], %19 {strides = array<i32>} : memref<8x10xf32, #tpu.memory_space<vmem>>, vector<8x10xf32>,
    return
  }
  func.func @transform_0(%arg0: i32) -> (i32, i32) {
    %c0_i32 = arith.constant 0 : i32
    %c0_i32_0 = arith.constant 0 : i32
    return %arg0, %c0_i32 : i32, i32
  }
  func.func @transform_1(%arg0: i32) -> (i32, i32) {
    %c0_i32 = arith.constant 0 : i32
    %c0_i32_0 = arith.constant 0 : i32
    %c0_i32_1 = arith.constant 0 : i32
    return %c0_i32, %c0_i32_0 : i32, i32
  }
  func.func @transform_2(%arg0: i32) -> (i32, i32) {
    %c0_i32 = arith.constant 0 : i32
    %c0_i32_0 = arith.constant 0 : i32
    %c0_i32_1 = arith.constant 0 : i32
    return %c0_i32, %c0_i32_0 : i32, i32
  }
  func.func @transform_3(%arg0: i32) -> (i32, i32) {
    %c0_i32 = arith.constant 0 : i32
    %c0_i32_0 = arith.constant 0 : i32
    %c0_i32_1 = arith.constant 0 : i32
    return %c0_i32, %c0_i32_0 : i32, i32
  }
  func.func @transform_4(%arg0: i32) -> (i32, i32) {
    %c0_i32 = arith.constant 0 : i32
    %c0_i32_0 = arith.constant 0 : i32
    %c0_i32_1 = arith.constant 0 : i32
    return %c0_i32, %c0_i32_0 : i32, i32
  }
  func.func @transform_5(%arg0: i32) -> (i32, i32) {
    %c0_i32 = arith.constant 0 : i32
    %c0_i32_0 = arith.constant 0 : i32
    %c0_i32_1 = arith.constant 0 : i32
    return %c0_i32, %c0_i32_0 : i32, i32
  }
  func.func @transform_6(%arg0: i32) -> (i32, i32) {
    %c0_i32 = arith.constant 0 : i32
    %c0_i32_0 = arith.constant 0 : i32
    %c0_i32_1 = arith.constant 0 : i32
    return %c0_i32, %c0_i32_0 : i32, i32
  }
  func.func @transform_7(%arg0: i32) -> (i32, i32) {
    %c0_i32 = arith.constant 0 : i32
    %c0_i32_0 = arith.constant 0 : i32
    return %arg0, %c0_i32 : i32, i32
  }
}

</mosaic_0001>

<bundles_post_ra>
// kernel: net_forward.3
= control target key start
LH: loop header
LB: loop body
LE: loop exit
PB: predicated region body
PF: predicated region fallthrough
CT: control target
= control target key end

     0   :  { %vm37_vm0 = vcmask 1040384   ;;  %v899_v0 = vmov 0.0|0.0   ;;  %v900_v4 = vmov 0.0   ;;  %vm901_vm1 = vmmov 0   ;;  %s1150_s0 = inlined_call_operand.vmem [shape: f32[4,25,384], index: 0, kind: input, shape index: {}]   ;;  %s1151_s1 = inlined_call_operand.vmem [shape: f32[6,25], index: 1, kind: input, shape index: {}]   ;;  %s1152_s2 = inlined_call_operand.vmem [shape: f32[6,1], index: 2, kind: input, shape index: {}]   ;;  %s1153_s3 = inlined_call_operand.vmem [shape: f32[6,384], index: 3, kind: output, shape index: {}]  }
   0x1   :  { %835 = vmatprep.subr.bf16.mxu1 %v899_v0  ;;  %v17_v1 = vld [vmem:[%s1150_s0 + $0x8] sm:$0xff]  ;;  %v20_v2 = vld [vmem:[%s1150_s0 + $0x20] sm:$0xff]  ;;  %v18_v3 = vld [vmem:[%s1150_s0 + $0x10] sm:$0xff]  ;;  %111 = vmatprep.mubr.f32.mxu0 %v900_v4  ;;  %v902_v9 = vmov 0   ;;  %vm903_vm2 = vmmov 1   ;;  %vm33_vm4 = vcmask 203776  }
   0x2   :  { %v825_v5 = vpack.c.bf16 %v20_v2, %v17_v1  ;;  %v21_v6 = vld [vmem:[%s1150_s0 + $0x28] sm:$0xff]  ;;  %v16_v7 = vld [vmem:[%s1150_s0] sm:$0xff]  ;;  %v19_v8 = vld [vmem:[%s1150_s0 + $0x18] sm:$0xff]  ;;  %789 = vmatprep.mubr.msk.f32.mxu1 %vm901_vm1, %v900_v4  ;;  %898 = vset.pattern.permute.xlu0 %v902_v9 }
   0x3   :  { %v836_v10 = vpack.c.bf16 %v21_v6, %v18_v3  ;;  %v827_v11 = vpack.c.bf16 %v19_v8, %v16_v7  ;;  %v23_v12 = vld [vmem:[%s1150_s0 + $0x38] sm:$0xff]  ;;  %v26_v13 = vld [vmem:[%s1150_s0 + $0x50] sm:$0x1]  ;;  %vm953_vm3 = vmpackc.low %vm37_vm0, %vm903_vm2 }
   0x4   :  { %826 = vmatprep.subr.bf16.mxu0 %v825_v5  ;;  %v829_v15 = vpack.c.bf16 %v26_v13, %v23_v12  ;;  %v24_v16 = vld [vmem:[%s1150_s0 + $0x40] sm:$0xff]  ;;  %v27_v17 = vld [vmem:[%s1150_s0 + $0x58] sm:$0x1]  ;;  %v22_v18 = vld [vmem:[%s1150_s0 + $0x30] sm:$0xff] }
   0x5   :  { %837 = vmatpush3.bf16.msra.mxu1 %v836_v10  ;;  %828 = vmatpush1.bf16.msra.mxu0 %v827_v11  ;;  %v839_v19 = vpack.c.bf16 %v27_v17, %v24_v16  ;;  %v25_v20 = vld [vmem:[%s1150_s0 + $0x48] sm:$0x1]  ;;  %v714_v23 = vld [vmem:[%s1150_s0 + $0x80] sm:$0xff]  ;;  %v712_v24 = vld [vmem:[%s1150_s0 + $0x70] sm:$0xff] }
   0x6   :  { %v711_v21 = vld [vmem:[%s1150_s0 + $0x68] sm:$0xff]  ;;  %838 = vmatprep.subr.bf16.mxu1 %v899_v0  ;;  %831 = vmatprep.subr.msk.bf16.mxu0 %vm953_vm3, %v829_v15  ;;  %v832_v22 = vpack.c.bf16 %v25_v20, %v22_v18  ;;  %v710_v27 = vld [vmem:[%s1150_s0 + $0x60] sm:$0xff]  ;;  %v713_v28 = vld [vmem:[%s1150_s0 + $0x78] sm:$0xff] }
   0x7   :  { %v715_v25 = vld [vmem:[%s1150_s0 + $0x88] sm:$0xff]  ;;  %v842_v26 = vpack.c.bf16 %v714_v23, %v711_v21  ;;  %v717_v29 = vld [vmem:[%s1150_s0 + $0x98] sm:$0xff]  ;;  %v720_v30 = vld [vmem:[%s1150_s0 + $0xb0] sm:$0x1]  ;;  %v844_v33 = vpack.c.bf16 %v713_v28, %v710_v27 }
   0x8   :  { %v1003_v31 = vld [vmem:[%s1151_s1] sm:$0x3f]  ;;  %v853_v32 = vpack.c.bf16 %v715_v25, %v712_v24  ;;  %v846_v35 = vpack.c.bf16 %v720_v30, %v717_v29  ;;  %v721_v36 = vld [vmem:[%s1150_s0 + $0xb8] sm:$0x1]  ;;  %v716_v37 = vld [vmem:[%s1150_s0 + $0x90] sm:$0xff] }
   0x9   :  { %841 = vmatpush3.bf16.msk.msra.mxu1 %vm953_vm3, %v839_v19  ;;  %834 = vmatpush1.bf16.msk.msra.mxu0 %vm953_vm3, %v832_v22  ;;  %v718_v34 = vld [vmem:[%s1150_s0 + $0xa0] sm:$0xff]  ;;  %v719_v38 = vld [vmem:[%s1150_s0 + $0xa8] sm:$0x1]  ;;  %v729_v43 = vld [vmem:[%s1150_s0 + $0xd0] sm:$0xff] }
   0xa   :  { %852 = vmatprep.subr.bf16.mxu1 %v899_v0  ;;  %843 = vmatprep.subr.bf16.mxu0 %v842_v26  ;;  %v728_v39 = vld [vmem:[%s1150_s0 + $0xc8] sm:$0xff]  ;;  %v731_v40 = vld [vmem:[%s1150_s0 + $0xe0] sm:$0xff]  ;;  %v856_v41 = vpack.c.bf16 %v721_v36, %v718_v34  ;;  %v849_v42 = vpack.c.bf16 %v719_v38, %v716_v37  ;;  %v730_v47 = vld [vmem:[%s1150_s0 + $0xd8] sm:$0xff] }
   0xb   :  { %v859_v44 = vpack.c.bf16 %v731_v40, %v728_v39  ;;  %v732_v45 = vld [vmem:[%s1150_s0 + $0xe8] sm:$0xff]  ;;  %v727_v46 = vld [vmem:[%s1150_s0 + $0xc0] sm:$0xff]  ;;  %v734_v48 = vld [vmem:[%s1150_s0 + $0xf8] sm:$0xff] }
   0xc   :  { %707 = vmatmul.mubr.msk.f32.vlgmr.msra.gmra.mrb[0].mxu0 %vm33_vm4, %v1003_v31  ;;  %790 = vmatmul.mubr.msk.f32.vlgmr.msra.gmra.mrb[0].mxu1 %vm33_vm4, %v1003_v31  ;;  %v737_v49 = vld [vmem:[%s1150_s0 + $0x110] sm:$0x1]  ;;  %v870_v50 = vpack.c.bf16 %v732_v45, %v729_v43  ;;  %v861_v51 = vpack.c.bf16 %v730_v47, %v727_v46  ;;  %v735_v52 = vld [vmem:[%s1150_s0 + $0x100] sm:$0xff]  ;;  %v738_v55 = vld [vmem:[%s1150_s0 + $0x118] sm:$0x1] }
   0xd   :  { %854 = vmatpush3.bf16.msra.mxu1 %v853_v32  ;;  %845 = vmatpush1.bf16.msra.mxu0 %v844_v33  ;;  %v15_v53 = vld [vmem:[%s1152_s2] sm:$0x3f]  ;;  %v863_v54 = vpack.c.bf16 %v737_v49, %v734_v48  ;;  %v733_v56 = vld [vmem:[%s1150_s0 + $0xf0] sm:$0xff]  ;;  %v736_v57 = vld [vmem:[%s1150_s0 + $0x108] sm:$0x1]  ;;  %v873_v60 = vpack.c.bf16 %v738_v55, %v735_v52 }
   0xe   :  { %855 = vmatprep.subr.bf16.mxu1 %v899_v0  ;;  %848 = vmatprep.subr.msk.bf16.mxu0 %vm953_vm3, %v846_v35  ;;  %v745_v58 = vld [vmem:[%s1150_s0 + $0x128] sm:$0xff]  ;;  %v748_v59 = vld [vmem:[%s1150_s0 + $0x140] sm:$0xff]  ;;  %v866_v61 = vpack.c.bf16 %v736_v57, %v733_v56  ;;  %v746_v62 = vld [vmem:[%s1150_s0 + $0x130] sm:$0xff] }
   0xf   :  { %800 = vmatprep.mubr.msk.f32.mxu1 %vm901_vm1, %v900_v4  ;;  %277 = vmatprep.mubr.f32.mxu0 %v900_v4  ;;  %v876_v63 = vpack.c.bf16 %v748_v59, %v745_v58  ;;  %v749_v1 = vld [vmem:[%s1150_s0 + $0x148] sm:$0xff]  ;;  %v744_v2 = vld [vmem:[%s1150_s0 + $0x120] sm:$0xff]  ;;  %v747_v3 = vld [vmem:[%s1150_s0 + $0x138] sm:$0xff] }
  0x10   :  { %30 = vperm.xlu0 %898, %v15_v53   ;;  %v751_v5 = vld [vmem:[%s1150_s0 + $0x158] sm:$0xff]  ;;  %v754_v6 = vld [vmem:[%s1150_s0 + $0x170] sm:$0x1]  ;;  %v887_v7 = vpack.c.bf16 %v749_v1, %v746_v62  ;;  %v878_v8 = vpack.c.bf16 %v747_v3, %v744_v2  ;;  %v752_v9 = vld [vmem:[%s1150_s0 + $0x160] sm:$0xff] }
  0x11   :  { %858 = vmatpush3.bf16.msk.msra.mxu1 %vm953_vm3, %v856_v41  ;;  %851 = vmatpush1.bf16.msk.msra.mxu0 %vm953_vm3, %v849_v42  ;;  %v880_v10 = vpack.c.bf16 %v754_v6, %v751_v5  ;;  %v755_v11 = vld [vmem:[%s1150_s0 + $0x178] sm:$0x1]  ;;  %v750_v12 = vld [vmem:[%s1150_s0 + $0x150] sm:$0xff]  ;;  %v753_v13 = vld [vmem:[%s1150_s0 + $0x168] sm:$0x1] }
  0x12   :  { %869 = vmatprep.subr.bf16.mxu1 %v899_v0  ;;  %860 = vmatprep.subr.bf16.mxu0 %v859_v44  ;;  %v890_v15 = vpack.c.bf16 %v755_v11, %v752_v9  ;;  %v883_v16 = vpack.c.bf16 %v753_v13, %v750_v12 }
  0x14   :  { %801 = vmatmul.mubr.msk.f32.vlgmr.msra.gmra.mrb[2].mxu1 %vm33_vm4, %v1003_v31  ;;  %724 = vmatmul.mubr.msk.f32.vlgmr.msra.gmra.mrb[2].mxu0 %vm33_vm4, %v1003_v31 }
  0x15   :  { %871 = vmatpush3.bf16.msra.mxu1 %v870_v50  ;;  %862 = vmatpush1.bf16.msra.mxu0 %v861_v51 }
  0x16   :  { %872 = vmatprep.subr.bf16.mxu1 %v899_v0  ;;  %865 = vmatprep.subr.msk.bf16.mxu0 %vm953_vm3, %v863_v54 }
  0x17   :  { %811 = vmatprep.mubr.msk.f32.mxu1 %vm901_vm1, %v900_v4  ;;  %446 = vmatprep.mubr.f32.mxu0 %v900_v4 }
  0x19   :  { %875 = vmatpush3.bf16.msk.msra.mxu1 %vm953_vm3, %v873_v60  ;;  %868 = vmatpush1.bf16.msk.msra.mxu0 %vm953_vm3, %v866_v61 }
  0x1a   :  { %886 = vmatprep.subr.bf16.mxu1 %v899_v0  ;;  %877 = vmatprep.subr.bf16.mxu0 %v876_v63 }
  0x1c   :  { %812 = vmatmul.mubr.msk.f32.vlgmr.msra.gmra.mrb[4].mxu1 %vm33_vm4, %v1003_v31  ;;  %741 = vmatmul.mubr.msk.f32.vlgmr.msra.gmra.mrb[4].mxu0 %vm33_vm4, %v1003_v31 }
  0x1d   :  { %888 = vmatpush3.bf16.msra.mxu1 %v887_v7  ;;  %879 = vmatpush1.bf16.msra.mxu0 %v878_v8 }
  0x1e   :  { %889 = vmatprep.subr.bf16.mxu1 %v899_v0  ;;  %882 = vmatprep.subr.msk.bf16.mxu0 %vm953_vm3, %v880_v10 }
  0x1f   :  { %822 = vmatprep.mubr.msk.f32.mxu1 %vm901_vm1, %v900_v4  ;;  %615 = vmatprep.mubr.f32.mxu0 %v900_v4 }
  0x21   :  { %892 = vmatpush3.bf16.msk.msra.mxu1 %vm953_vm3, %v890_v15  ;;  %885 = vmatpush1.bf16.msk.msra.mxu0 %vm953_vm3, %v883_v16 }
  0x24   :  { %823 = vmatmul.mubr.msk.f32.vlgmr.msra.gmra.mrb[6].mxu1 %vm33_vm4, %v1003_v31  ;;  %758 = vmatmul.mubr.msk.f32.vlgmr.msra.gmra.mrb[6].mxu0 %vm33_vm4, %v1003_v31 }
  0x8f   :  { %v31_v20 = vpop.permute.xlu0 %30 }
  0xdf   :  { %v113_v0 = vpop.f32.mrb[0].mxu0  ;;  %v184_v17 = vpop.f32.mrb[0].mxu1 }
  0xe0   :  { %v115_v18 = vpop.f32.mrb[1].mxu0  ;;  %v791_v19 = vpop.f32.mrb[1].mxu1  ;;  %v185_v21 = vadd.f32 %v184_v17, %v31_v20  ;;  %v114_v22 = vadd.f32 %v113_v0, %v31_v20 }
  0xe1   :  { %v116_v4 = vadd.f32 %v115_v18, %v31_v20 }
  0xe2   :  { %v190_v29 = vmax.f32 %v185_v21, 0.0  ;;  %v188_v32 = vmax.f32 %v114_v22, 0.0 }
  0xe3   :  { %v189_v31 = vmax.f32 %v116_v4, 0.0 }
  0xe7   :  { %v350_v23 = vpop.f32.mrb[2].mxu1  ;;  %v279_v24 = vpop.f32.mrb[2].mxu0 }
  0xe8   :  { %v351_v25 = vadd.f32 %v350_v23, %v31_v20  ;;  %v280_v26 = vadd.f32 %v279_v24, %v31_v20  ;;  %v281_v14 = vpop.f32.mrb[3].mxu0  ;;  %v802_v27 = vpop.f32.mrb[3].mxu1 }
  0xe9   :  { %v282_v28 = vadd.f32 %v281_v14, %v31_v20 }
  0xea   :  { %v356_v30 = vmax.f32 %v351_v25, 0.0  ;;  %v354_v33 = vmax.f32 %v280_v26, 0.0 }
  0xeb   :  { %v355_v34 = vmax.f32 %v282_v28, 0.0 }
  0xec   :  { %v359_v35 = vmax.f32 %v190_v29, %v356_v30  ;;  %v357_v36 = vmax.f32 %v188_v32, %v354_v33 }
  0xed   :  { %v358_v37 = vmax.f32 %v189_v31, %v355_v34 }
  0xef   :  { %v519_v38 = vpop.f32.mrb[4].mxu1  ;;  %v448_v39 = vpop.f32.mrb[4].mxu0 }
  0xf0   :  { %v520_v40 = vadd.f32 %v519_v38, %v31_v20  ;;  %v449_v41 = vadd.f32 %v448_v39, %v31_v20  ;;  %v450_v42 = vpop.f32.mrb[5].mxu0  ;;  %v813_v43 = vpop.f32.mrb[5].mxu1 }
  0xf1   :  { %v451_v44 = vadd.f32 %v450_v42, %v31_v20 }
  0xf2   :  { %v525_v45 = vmax.f32 %v520_v40, 0.0  ;;  %v523_v46 = vmax.f32 %v449_v41, 0.0 }
  0xf3   :  { %v524_v47 = vmax.f32 %v451_v44, 0.0 }
  0xf4   :  { %v528_v48 = vmax.f32 %v359_v35, %v525_v45  ;;  %v526_v49 = vmax.f32 %v357_v36, %v523_v46 }
  0xf5   :  { %v527_v50 = vmax.f32 %v358_v37, %v524_v47 }
  0xf7   :  { %v688_v51 = vpop.f32.mrb[6].mxu1  ;;  %v617_v52 = vpop.f32.mrb[6].mxu0 }
  0xf8   :  { %v689_v53 = vadd.f32 %v688_v51, %v31_v20  ;;  %v618_v54 = vadd.f32 %v617_v52, %v31_v20  ;;  %v619_v55 = vpop.f32.mrb[7].mxu0  ;;  %v824_v56 = vpop.f32.mrb[7].mxu1 }
  0xf9   :  { %v620_v57 = vadd.f32 %v619_v55, %v31_v20 }
  0xfa   :  { %v694_v58 = vmax.f32 %v689_v53, 0.0  ;;  %v692_v59 = vmax.f32 %v618_v54, 0.0 }
  0xfb   :  { %v693_v60 = vmax.f32 %v620_v57, 0.0 }
  0xfc   :  { %v697_v61 = vmax.f32 %v528_v48, %v694_v58  ;;  %v695_v62 = vmax.f32 %v526_v49, %v692_v59 }
  0xfd   :  { %v696_v63 = vmax.f32 %v527_v50, %v693_v60 }
  0xfe   :  { %700 = vst [vmem:[%s1153_s3 + $0x10] sm:$0x3f] %v697_v61  ;;  %698 = vst [vmem:[%s1153_s3] sm:$0x3f] %v695_v62 }
  0xff   :  { %699 = vst [vmem:[%s1153_s3 + $0x8] sm:$0x3f] %v696_v63 }

// kernel: net_forward.4
= control target key start
LH: loop header
LB: loop body
LE: loop exit
PB: predicated region body
PF: predicated region fallthrough
CT: control target
= control target key end

     0   :  { %v630_v0 = vmov 0.0|0.0   ;;  %v631_v8 = vmov 0   ;;  %vm49_vm0 = vcmask 179200   ;;  %v632_v61 = vmov 0.0   ;;  %s981_s0 = inlined_call_operand.vmem [shape: f32[4,150,128], index: 0, kind: input, shape index: {}]   ;;  %s982_s1 = inlined_call_operand.vmem [shape: f32[16,150], index: 1, kind: input, shape index: {}]   ;;  %s983_s2 = inlined_call_operand.vmem [shape: f32[16,1], index: 2, kind: input, shape index: {}]   ;;  %s984_s3 = inlined_call_operand.vmem [shape: f32[16,128], index: 3, kind: output, shape index: {}]  }
   0x1   :  { %518 = vmatprep.subr.bf16.mxu0 %v630_v0  ;;  %545 = vmatprep.subr.bf16.mxu1 %v630_v0  ;;  %v20_v1 = vld [vmem:[%s981_s0] sm:$0xff]  ;;  %v21_v2 = vld [vmem:[%s981_s0 + $0x8] sm:$0xff]  ;;  %v452_v3 = vld [vmem:[%s981_s0 + $0x98] sm:$0xff]  ;;  %vm56_vm1 = vcmask 1045504  }
   0x2   :  { %v519_v4 = vpack.c.bf16 %v21_v2, %v20_v1  ;;  %v453_v5 = vld [vmem:[%s981_s0 + $0xa0] sm:$0xff]  ;;  %v22_v6 = vld [vmem:[%s981_s0 + $0x10] sm:$0xff]  ;;  %v23_v7 = vld [vmem:[%s981_s0 + $0x18] sm:$0xff]  ;;  %629 = vset.pattern.permute.xlu0 %v631_v8 }
   0x3   :  { %v546_v9 = vpack.c.bf16 %v453_v5, %v452_v3  ;;  %v454_v10 = vld [vmem:[%s981_s0 + $0xa8] sm:$0xff]  ;;  %v455_v11 = vld [vmem:[%s981_s0 + $0xb0] sm:$0xff]  ;;  %v522_v12 = vpack.c.bf16 %v23_v7, %v22_v6  ;;  %v24_v14 = vld [vmem:[%s981_s0 + $0x20] sm:$0xff] }
   0x4   :  { %520 = vmatpush1.bf16.msra.mxu0 %v519_v4  ;;  %v549_v13 = vpack.c.bf16 %v455_v11, %v454_v10  ;;  %v25_v15 = vld [vmem:[%s981_s0 + $0x28] sm:$0xff]  ;;  %v456_v16 = vld [vmem:[%s981_s0 + $0xb8] sm:$0xff]  ;;  %v457_v17 = vld [vmem:[%s981_s0 + $0xc0] sm:$0xff] }
   0x5   :  { %547 = vmatpush1.bf16.msra.mxu1 %v546_v9  ;;  %521 = vmatprep.subr.bf16.mxu0 %v630_v0  ;;  %v525_v18 = vpack.c.bf16 %v25_v15, %v24_v14  ;;  %v552_v19 = vpack.c.bf16 %v457_v17, %v456_v16  ;;  %v26_v20 = vld [vmem:[%s981_s0 + $0x30] sm:$0xff]  ;;  %v27_v21 = vld [vmem:[%s981_s0 + $0x38] sm:$0xff]  ;;  %v458_v22 = vld [vmem:[%s981_s0 + $0xc8] sm:$0xff] }
   0x6   :  { %548 = vmatprep.subr.bf16.mxu1 %v630_v0  ;;  %v459_v23 = vld [vmem:[%s981_s0 + $0xd0] sm:$0xff]  ;;  %v528_v24 = vpack.c.bf16 %v27_v21, %v26_v20  ;;  %v28_v26 = vld [vmem:[%s981_s0 + $0x40] sm:$0xff]  ;;  %v29_v27 = vld [vmem:[%s981_s0 + $0x48] sm:$0xff] }
   0x7   :  { %v555_v25 = vpack.c.bf16 %v459_v23, %v458_v22  ;;  %v717_v28 = vld [vmem:[%s982_s1 + $0x8] sm:$0xff]  ;;  %v460_v29 = vld [vmem:[%s981_s0 + $0xd8] sm:$0xff]  ;;  %v461_v30 = vld [vmem:[%s981_s0 + $0xe0] sm:$0xff]  ;;  %v531_v31 = vpack.c.bf16 %v29_v27, %v28_v26 }
   0x8   :  { %523 = vmatpush1.bf16.msra.mxu0 %v522_v12  ;;  %450 = vmatprep.mubr.msk.f32.mxu0 %vm49_vm0, %v717_v28  ;;  %v558_v32 = vpack.c.bf16 %v461_v30, %v460_v29  ;;  %v30_v33 = vld [vmem:[%s981_s0 + $0x50] sm:$0xff]  ;;  %v31_v34 = vld [vmem:[%s981_s0 + $0x58] sm:$0xff]  ;;  %v462_v35 = vld [vmem:[%s981_s0 + $0xe8] sm:$0xff] }
   0x9   :  { %550 = vmatpush1.bf16.msra.mxu1 %v549_v13  ;;  %524 = vmatprep.subr.bf16.mxu0 %v630_v0  ;;  %v463_v36 = vld [vmem:[%s981_s0 + $0xf0] sm:$0xff]  ;;  %v534_v37 = vpack.c.bf16 %v31_v34, %v30_v33  ;;  %v32_v39 = vld [vmem:[%s981_s0 + $0x60] sm:$0xff]  ;;  %v33_v40 = vld [vmem:[%s981_s0 + $0x68] sm:$0xff] }
   0xa   :  { %551 = vmatprep.subr.bf16.mxu1 %v630_v0  ;;  %472 = vmatprep.mubr.msk.f32.mxu1 %vm49_vm0, %v717_v28  ;;  %v561_v38 = vpack.c.bf16 %v463_v36, %v462_v35  ;;  %v464_v41 = vld [vmem:[%s981_s0 + $0xf8] sm:$0xff]  ;;  %v465_v42 = vld [vmem:[%s981_s0 + $0x100] sm:$0xff]  ;;  %v537_v43 = vpack.c.bf16 %v33_v40, %v32_v39  ;;  %v34_v45 = vld [vmem:[%s981_s0 + $0x70] sm:$0xff] }
   0xb   :  { %v564_v44 = vpack.c.bf16 %v465_v42, %v464_v41  ;;  %v35_v46 = vld [vmem:[%s981_s0 + $0x78] sm:$0xff]  ;;  %v466_v47 = vld [vmem:[%s981_s0 + $0x108] sm:$0xff]  ;;  %v467_v48 = vld [vmem:[%s981_s0 + $0x110] sm:$0xff] }
   0xc   :  { %526 = vmatpush1.bf16.msra.mxu0 %v525_v18  ;;  %v18_v49 = vld [vmem:[%s983_s2] sm:$0xff]  ;;  %v540_v50 = vpack.c.bf16 %v35_v46, %v34_v45  ;;  %v567_v51 = vpack.c.bf16 %v467_v48, %v466_v47  ;;  %v37_v53 = vld [vmem:[%s981_s0 + $0x88] sm:$0xff]  ;;  %v468_v55 = vld [vmem:[%s981_s0 + $0x118] sm:$0xff] }
   0xd   :  { %553 = vmatpush1.bf16.msra.mxu1 %v552_v19  ;;  %527 = vmatprep.subr.bf16.mxu0 %v630_v0  ;;  %v36_v52 = vld [vmem:[%s981_s0 + $0x80] sm:$0xff]  ;;  %v19_v54 = vld [vmem:[%s983_s2 + $0x8] sm:$0xff]  ;;  %v474_v59 = vld [vmem:[%s981_s0 + $0x130] sm:$0xff] }
   0xe   :  { %554 = vmatprep.subr.bf16.mxu1 %v630_v0  ;;  %41 = vperm.xlu0 %629, %v18_v49   ;;  %v469_v56 = vld [vmem:[%s981_s0 + $0x120] sm:$0xff]  ;;  %v543_v57 = vpack.c.bf16 %v37_v53, %v36_v52  ;;  %v475_v60 = vld [vmem:[%s981_s0 + $0x138] sm:$0xff]  ;;  %v38_v62 = vld [vmem:[%s981_s0 + $0x90] sm:$0x3f] }
   0xf   :  { %v570_v58 = vpack.c.bf16 %v469_v56, %v468_v55  ;;  %v496_v63 = vld [vmem:[%s981_s0 + $0x1c8] sm:$0xff]  ;;  %v497_v1 = vld [vmem:[%s981_s0 + $0x1d0] sm:$0xff]  ;;  %v817_v3 = vld [vmem:[%s982_s1] sm:$0xff]  ;;  %v573_v4 = vpack.c.bf16 %v475_v60, %v474_v59 }
  0x10   :  { %529 = vmatpush1.bf16.msra.mxu0 %v528_v24  ;;  %v470_v2 = vld [vmem:[%s981_s0 + $0x128] sm:$0x3f]  ;;  %v600_v5 = vpack.c.bf16 %v497_v1, %v496_v63  ;;  %v476_v6 = vld [vmem:[%s981_s0 + $0x140] sm:$0xff]  ;;  %v498_v8 = vld [vmem:[%s981_s0 + $0x1d8] sm:$0xff] }
  0x11   :  { %556 = vmatpush1.bf16.msra.mxu1 %v555_v25  ;;  %530 = vmatprep.subr.bf16.mxu0 %v630_v0  ;;  %v477_v7 = vld [vmem:[%s981_s0 + $0x148] sm:$0xff]  ;;  %v499_v9 = vld [vmem:[%s981_s0 + $0x1e0] sm:$0xff]  ;;  %v839_v10 = vld [vmem:[%s982_s1 + $0x18] sm:$0xff] }
  0x12   :  { %557 = vmatprep.subr.bf16.mxu1 %v630_v0  ;;  %46 = vperm.xlu0 %629, %v19_v54   ;;  %v576_v11 = vpack.c.bf16 %v477_v7, %v476_v6  ;;  %v845_v12 = vld [vmem:[%s982_s1 + $0x10] sm:$0xff]  ;;  %v603_v13 = vpack.c.bf16 %v499_v9, %v498_v8  ;;  %v479_v15 = vld [vmem:[%s981_s0 + $0x158] sm:$0xff]  ;;  %v500_v16 = vld [vmem:[%s981_s0 + $0x1e8] sm:$0xff] }
  0x13   :  { %v478_v14 = vld [vmem:[%s981_s0 + $0x150] sm:$0xff]  ;;  %v480_v20 = vld [vmem:[%s981_s0 + $0x160] sm:$0xff]  ;;  %v481_v21 = vld [vmem:[%s981_s0 + $0x168] sm:$0xff] }
  0x14   :  { %532 = vmatpush1.bf16.msra.mxu0 %v531_v31  ;;  %v501_v17 = vld [vmem:[%s981_s0 + $0x1f0] sm:$0xff]  ;;  %v579_v18 = vpack.c.bf16 %v479_v15, %v478_v14  ;;  %v502_v22 = vld [vmem:[%s981_s0 + $0x1f8] sm:$0xff]  ;;  %v503_v23 = vld [vmem:[%s981_s0 + $0x200] sm:$0xff]  ;;  %v582_v24 = vpack.c.bf16 %v481_v21, %v480_v20 }
  0x15   :  { %559 = vmatpush1.bf16.msra.mxu1 %v558_v32  ;;  %533 = vmatprep.subr.bf16.mxu0 %v630_v0  ;;  %v606_v19 = vpack.c.bf16 %v501_v17, %v500_v16  ;;  %v609_v25 = vpack.c.bf16 %v503_v23, %v502_v22  ;;  %v482_v26 = vld [vmem:[%s981_s0 + $0x170] sm:$0xff]  ;;  %v483_v27 = vld [vmem:[%s981_s0 + $0x178] sm:$0xff]  ;;  %v484_v32 = vld [vmem:[%s981_s0 + $0x180] sm:$0xff] }
  0x16   :  { %560 = vmatprep.subr.bf16.mxu1 %v630_v0  ;;  %v505_v29 = vld [vmem:[%s981_s0 + $0x210] sm:$0xff]  ;;  %v585_v30 = vpack.c.bf16 %v483_v27, %v482_v26  ;;  %v485_v33 = vld [vmem:[%s981_s0 + $0x188] sm:$0xff]  ;;  %v506_v34 = vld [vmem:[%s981_s0 + $0x218] sm:$0xff] }
  0x17   :  { %v507_v35 = vld [vmem:[%s981_s0 + $0x220] sm:$0xff]  ;;  %v588_v36 = vpack.c.bf16 %v485_v33, %v484_v32  ;;  %v487_v39 = vld [vmem:[%s981_s0 + $0x198] sm:$0xff]  ;;  %v508_v40 = vld [vmem:[%s981_s0 + $0x228] sm:$0xff] }
  0x18   :  { %535 = vmatpush1.bf16.msra.mxu0 %v534_v37  ;;  %v615_v37 = vpack.c.bf16 %v507_v35, %v506_v34  ;;  %v509_v41 = vld [vmem:[%s981_s0 + $0x230] sm:$0xff]  ;;  %v489_v45 = vld [vmem:[%s981_s0 + $0x1a8] sm:$0xff]  ;;  %v510_v46 = vld [vmem:[%s981_s0 + $0x238] sm:$0xff] }
  0x19   :  { %562 = vmatpush1.bf16.msra.mxu1 %v561_v38  ;;  %536 = vmatprep.subr.bf16.mxu0 %v630_v0  ;;  %v486_v38 = vld [vmem:[%s981_s0 + $0x190] sm:$0xff]  ;;  %v511_v47 = vld [vmem:[%s981_s0 + $0x240] sm:$0xff]  ;;  %v512_v52 = vld [vmem:[%s981_s0 + $0x248] sm:$0xff] }
  0x1a   :  { %563 = vmatprep.subr.bf16.mxu1 %v630_v0  ;;  %v591_v42 = vpack.c.bf16 %v487_v39, %v486_v38  ;;  %v621_v49 = vpack.c.bf16 %v511_v47, %v510_v46  ;;  %v513_v53 = vld [vmem:[%s981_s0 + $0x250] sm:$0xff]  ;;  %v492_v56 = vld [vmem:[%s981_s0 + $0x1c0] sm:$0x3f] }
  0x1b   :  { %v624_v55 = vpack.c.bf16 %v513_v53, %v512_v52 }
  0x1c   :  { %538 = vmatpush1.bf16.msra.mxu0 %v537_v43  ;;  %v618_v43 = vpack.c.bf16 %v509_v41, %v508_v40 }
  0x1d   :  { %565 = vmatpush1.bf16.msra.mxu1 %v564_v44  ;;  %539 = vmatprep.subr.bf16.mxu0 %v630_v0  ;;  %v488_v44 = vld [vmem:[%s981_s0 + $0x1a0] sm:$0xff] }
  0x1e   :  { %566 = vmatprep.subr.bf16.mxu1 %v630_v0  ;;  %v594_v48 = vpack.c.bf16 %v489_v45, %v488_v44 }
  0x20   :  { %541 = vmatpush1.bf16.msra.mxu0 %v540_v50  ;;  %v490_v50 = vld [vmem:[%s981_s0 + $0x1b0] sm:$0xff] }
  0x21   :  { %568 = vmatpush1.bf16.msra.mxu1 %v567_v51  ;;  %542 = vmatprep.subr.bf16.mxu0 %v630_v0  ;;  %v491_v51 = vld [vmem:[%s981_s0 + $0x1b8] sm:$0xff] }
  0x22   :  { %569 = vmatprep.subr.bf16.mxu1 %v630_v0  ;;  %v597_v54 = vpack.c.bf16 %v491_v51, %v490_v50 }
  0x24   :  { %544 = vmatpush1.bf16.msra.mxu0 %v543_v57  ;;  %v514_v57 = vld [vmem:[%s981_s0 + $0x258] sm:$0x3f] }
  0x25   :  { %571 = vmatpush1.bf16.msra.mxu1 %v570_v58  ;;  %96 = vmatprep.subr.mxu0 %v632_v61 }
  0x26   :  { %196 = vmatprep.subr.mxu1 %v632_v61 }
  0x28   :  { %449 = vmatpush1.msk.msra.mxu0 %vm56_vm1, %v38_v62 }
  0x29   :  { %471 = vmatpush1.msk.msra.mxu1 %vm56_vm1, %v470_v2  ;;  %125 = vmatmul.mubr.f32.vlgmr.msra.gmra.mrb[0].mxu0 %v817_v3 }
  0x2a   :  { %572 = vmatprep.subr.bf16.mxu0 %v630_v0  ;;  %599 = vmatprep.subr.bf16.mxu1 %v630_v0 }
  0x2b   :  { %225 = vmatmul.mubr.f32.vlgmr.msra.gmra.mrb[0].mxu1 %v817_v3  ;;  %574 = vmatpush1.bf16.msra.mxu0 %v573_v4 }
  0x2c   :  { %601 = vmatpush1.bf16.msra.mxu1 %v600_v5  ;;  %575 = vmatprep.subr.bf16.mxu0 %v630_v0 }
  0x2d   :  { %602 = vmatprep.subr.bf16.mxu1 %v630_v0  ;;  %451 = vmatprep.mubr.msk.f32.mxu0 %vm49_vm0, %v839_v10 }
  0x2e   :  { %130 = vmatmul.mubr.f32.gmra.mrb[2].mxu0 %v845_v12  ;;  %473 = vmatprep.mubr.msk.f32.mxu1 %vm49_vm0, %v839_v10 }
  0x2f   :  { %577 = vmatpush1.bf16.msra.mxu0 %v576_v11  ;;  %230 = vmatmul.mubr.f32.gmra.mrb[2].mxu1 %v845_v12 }
  0x30   :  { %604 = vmatpush1.bf16.msra.mxu1 %v603_v13  ;;  %578 = vmatprep.subr.bf16.mxu0 %v630_v0 }
  0x31   :  { %605 = vmatprep.subr.bf16.mxu1 %v630_v0  ;;  %494 = vmatprep.mubr.msk.f32.mxu0 %vm49_vm0, %v717_v28 }
  0x32   :  { %516 = vmatprep.mubr.msk.f32.mxu1 %vm49_vm0, %v717_v28  ;;  %v504_v28 = vld [vmem:[%s981_s0 + $0x208] sm:$0xff] }
  0x33   :  { %580 = vmatpush1.bf16.msra.mxu0 %v579_v18  ;;  %v612_v31 = vpack.c.bf16 %v505_v29, %v504_v28 }
  0x34   :  { %607 = vmatpush1.bf16.msra.mxu1 %v606_v19  ;;  %581 = vmatprep.subr.bf16.mxu0 %v630_v0 }
  0x35   :  { %608 = vmatprep.subr.bf16.mxu1 %v630_v0 }
  0x37   :  { %583 = vmatpush1.bf16.msra.mxu0 %v582_v24 }
  0x38   :  { %610 = vmatpush1.bf16.msra.mxu1 %v609_v25  ;;  %584 = vmatprep.subr.bf16.mxu0 %v630_v0 }
  0x39   :  { %611 = vmatprep.subr.bf16.mxu1 %v630_v0 }
  0x3b   :  { %586 = vmatpush1.bf16.msra.mxu0 %v585_v30 }
  0x3c   :  { %613 = vmatpush1.bf16.msra.mxu1 %v612_v31  ;;  %587 = vmatprep.subr.bf16.mxu0 %v630_v0 }
  0x3d   :  { %614 = vmatprep.subr.bf16.mxu1 %v630_v0 }
  0x3f   :  { %589 = vmatpush1.bf16.msra.mxu0 %v588_v36 }
  0x40   :  { %616 = vmatpush1.bf16.msra.mxu1 %v615_v37  ;;  %590 = vmatprep.subr.bf16.mxu0 %v630_v0 }
  0x41   :  { %617 = vmatprep.subr.bf16.mxu1 %v630_v0 }
  0x43   :  { %592 = vmatpush1.bf16.msra.mxu0 %v591_v42 }
  0x44   :  { %619 = vmatpush1.bf16.msra.mxu1 %v618_v43  ;;  %593 = vmatprep.subr.bf16.mxu0 %v630_v0 }
  0x45   :  { %620 = vmatprep.subr.bf16.mxu1 %v630_v0 }
  0x47   :  { %595 = vmatpush1.bf16.msra.mxu0 %v594_v48 }
  0x48   :  { %622 = vmatpush1.bf16.msra.mxu1 %v621_v49  ;;  %596 = vmatprep.subr.bf16.mxu0 %v630_v0 }
  0x49   :  { %623 = vmatprep.subr.bf16.mxu1 %v630_v0 }
  0x4b   :  { %598 = vmatpush1.bf16.msra.mxu0 %v597_v54 }
  0x4c   :  { %625 = vmatpush1.bf16.msra.mxu1 %v624_v55  ;;  %298 = vmatprep.subr.mxu0 %v632_v61 }
  0x4d   :  { %400 = vmatprep.subr.mxu1 %v632_v61 }
  0x4f   :  { %493 = vmatpush1.msk.msra.mxu0 %vm56_vm1, %v492_v56 }
  0x50   :  { %515 = vmatpush1.msk.msra.mxu1 %vm56_vm1, %v514_v57  ;;  %327 = vmatmul.mubr.f32.vlgmr.msra.gmra.mrb[4].mxu0 %v817_v3 }
  0x51   :  { %429 = vmatmul.mubr.f32.vlgmr.msra.gmra.mrb[4].mxu1 %v817_v3  ;;  %495 = vmatprep.mubr.msk.f32.mxu0 %vm49_vm0, %v839_v10 }
  0x52   :  { %517 = vmatprep.mubr.msk.f32.mxu1 %vm49_vm0, %v839_v10 }
  0x54   :  { %332 = vmatmul.mubr.f32.gmra.mrb[6].mxu0 %v845_v12 }
  0x55   :  { %434 = vmatmul.mubr.f32.gmra.mrb[6].mxu1 %v845_v12 }
  0x8d   :  { %v42_v0 = vpop.permute.xlu0 %41 }
  0x91   :  { %v47_v2 = vpop.permute.xlu0 %46 }
  0xfc   :  { %v126_v58 = vpop.f32.mrb[0].mxu0 }
  0xfd   :  { %v128_v59 = vpop.f32.mrb[1].mxu0  ;;  %v127_v60 = vadd.f32 %v126_v58, %v42_v0 }
  0xfe   :  { %v226_v61 = vpop.f32.mrb[0].mxu1 }
  0xff   :  { %v135_v62 = vmax.f32 %v127_v60, 0.0  ;;  %v227_v63 = vadd.f32 %v226_v61, %v42_v0  ;;  %v228_v1 = vpop.f32.mrb[1].mxu1 }
 0x101   :  { %v235_v3 = vmax.f32 %v227_v63, 0.0  ;;  %v131_v4 = vpop.f32.mrb[2].mxu0 }
 0x102   :  { %v132_v5 = vadd.f32 %v131_v4, %v47_v2  ;;  %v133_v6 = vpop.f32.mrb[3].mxu0  ;;  %v231_v7 = vpop.f32.mrb[2].mxu1 }
 0x103   :  { %v237_v8 = vmax.f32 %v135_v62, %v235_v3  ;;  %v232_v9 = vadd.f32 %v231_v7, %v47_v2  ;;  %v233_v10 = vpop.f32.mrb[3].mxu1 }
 0x104   :  { %v136_v11 = vmax.f32 %v132_v5, 0.0 }
 0x105   :  { %v236_v13 = vmax.f32 %v232_v9, 0.0 }
 0x107   :  { %v238_v12 = vmax.f32 %v136_v11, %v236_v13 }
 0x123   :  { %v328_v14 = vpop.f32.mrb[4].mxu0 }
 0x124   :  { %v329_v15 = vadd.f32 %v328_v14, %v42_v0  ;;  %v430_v16 = vpop.f32.mrb[4].mxu1  ;;  %v330_v17 = vpop.f32.mrb[5].mxu0 }
 0x125   :  { %v431_v18 = vadd.f32 %v430_v16, %v42_v0  ;;  %v432_v19 = vpop.f32.mrb[5].mxu1 }
 0x126   :  { %v337_v20 = vmax.f32 %v329_v15, 0.0 }
 0x127   :  { %v333_v21 = vpop.f32.mrb[6].mxu0  ;;  %v439_v23 = vmax.f32 %v431_v18, 0.0 }
 0x128   :  { %v339_v22 = vmax.f32 %v237_v8, %v337_v20  ;;  %v334_v24 = vadd.f32 %v333_v21, %v47_v2  ;;  %v435_v25 = vpop.f32.mrb[6].mxu1  ;;  %v335_v26 = vpop.f32.mrb[7].mxu0 }
 0x129   :  { %v436_v27 = vadd.f32 %v435_v25, %v47_v2  ;;  %v437_v28 = vpop.f32.mrb[7].mxu1 }
 0x12a   :  { %v441_v29 = vmax.f32 %v339_v22, %v439_v23  ;;  %v338_v30 = vmax.f32 %v334_v24, 0.0 }
 0x12b   :  { %v440_v32 = vmax.f32 %v436_v27, 0.0 }
 0x12c   :  { %443 = vst [vmem:[%s984_s3] sm:$0xff] %v441_v29  ;;  %v340_v31 = vmax.f32 %v238_v12, %v338_v30 }
 0x12e   :  { %v442_v33 = vmax.f32 %v340_v31, %v440_v32 }
 0x130   :  { %444 = vst [vmem:[%s984_s3 + $0x8] sm:$0xff] %v442_v33 }

// kernel: net_forward.5
= control target key start
LH: loop header
LB: loop body
LE: loop exit
PB: predicated region body
PF: predicated region fallthrough
CT: control target
= control target key end

     0   :  { %v535_v3 = vmov 0.0|0.0   ;;  %vm537_vm0 = vmmov 0   ;;  %vm160_vm1 = vcmask 982016   ;;  %vm257_vm2 = vcmask 1043456   ;;  %s784_s1 = inlined_call_operand.vmem [shape: f32[256,120], index: 1, kind: input, shape index: {}]   ;;  %s785_s0 = inlined_call_operand.vmem [shape: f32[8,256], index: 0, kind: input, shape index: {}]   ;;  %s786_s3 = inlined_call_operand.vmem [shape: f32[120,84], index: 3, kind: input, shape index: {}]   ;;  %s787_s2 = inlined_call_operand.vmem [shape: f32[1,120], index: 2, kind: input, shape index: {}]   ;;  %s788_s5 = inlined_call_operand.vmem [shape: f32[84,10], index: 5, kind: input, shape index: {}]   ;;  %s789_s4 = inlined_call_operand.vmem [shape: f32[1,84], index: 4, kind: input, shape index: {}]   ;;  %s790_s6 = inlined_call_operand.vmem [shape: f32[1,10], index: 6, kind: input, shape index: {}]   ;;  %s791_s7 = inlined_call_operand.vmem [shape: f32[8,10], index: 7, kind: output, shape index: {}]  }
   0x1   :  { %v44_v0 = vld [vmem:[%s784_s1 + $0x80] sm:$0xff]  ;;  %v45_v1 = vld [vmem:[%s784_s1 + $0x88] sm:$0xff]  ;;  %496 = vmatprep.subr.bf16.mxu1 %v535_v3  ;;  %v46_v6 = vld [vmem:[%s784_s1 + $0x90] sm:$0xff]  ;;  %vm253_vm3 = vcmask 687104   ;;  %vm331_vm4 = vcmask 80896  }
   0x2   :  { %v28_v2 = vld [vmem:[%s784_s1] sm:$0xff]  ;;  %v464_v4 = vpack.c.bf16 %v45_v1, %v44_v0  ;;  %v29_v5 = vld [vmem:[%s784_s1 + $0x8] sm:$0xff]  ;;  %v47_v7 = vld [vmem:[%s784_s1 + $0x98] sm:$0xff] }
   0x3   :  { %v466_v8 = vpack.c.bf16 %v29_v5, %v28_v2  ;;  %v468_v9 = vpack.c.bf16 %v47_v7, %v46_v6  ;;  %v30_v10 = vld [vmem:[%s784_s1 + $0x10] sm:$0xff]  ;;  %v31_v11 = vld [vmem:[%s784_s1 + $0x18] sm:$0xff]  ;;  %v48_v12 = vld [vmem:[%s784_s1 + $0xa0] sm:$0xff] }
   0x4   :  { %465 = vmatprep.subr.bf16.mxu0 %v464_v4  ;;  %v49_v13 = vld [vmem:[%s784_s1 + $0xa8] sm:$0xff]  ;;  %v470_v14 = vpack.c.bf16 %v31_v11, %v30_v10  ;;  %v32_v16 = vld [vmem:[%s784_s1 + $0x20] sm:$0xff]  ;;  %v50_v18 = vld [vmem:[%s784_s1 + $0xb0] sm:$0xff] }
   0x5   :  { %467 = vmatpush3.bf16.msra.mxu0 %v466_v8  ;;  %v472_v15 = vpack.c.bf16 %v49_v13, %v48_v12  ;;  %v33_v17 = vld [vmem:[%s784_s1 + $0x28] sm:$0xff]  ;;  %v51_v19 = vld [vmem:[%s784_s1 + $0xb8] sm:$0xff]  ;;  %v34_v22 = vld [vmem:[%s784_s1 + $0x30] sm:$0xff] }
   0x6   :  { %469 = vmatprep.subr.bf16.mxu0 %v468_v9  ;;  %v474_v20 = vpack.c.bf16 %v33_v17, %v32_v16  ;;  %v476_v21 = vpack.c.bf16 %v51_v19, %v50_v18  ;;  %v35_v23 = vld [vmem:[%s784_s1 + $0x38] sm:$0xff]  ;;  %v52_v24 = vld [vmem:[%s784_s1 + $0xc0] sm:$0xff]  ;;  %v53_v25 = vld [vmem:[%s784_s1 + $0xc8] sm:$0xff]  ;;  %v536_v9 = vmov 0.0  }
   0x7   :  { %v27_v26 = vld [vmem:[%s785_s0 + $0x8] sm:$0xff]  ;;  %v138_v27 = vld [vmem:[%s786_s3] sm:$0xff]  ;;  %v478_v29 = vpack.c.bf16 %v35_v23, %v34_v22  ;;  %v140_v31 = vld [vmem:[%s786_s3 + $0x10] sm:$0xff]  ;;  %v480_v33 = vpack.c.bf16 %v53_v25, %v52_v24  ;;  %436 = vmatprep.mubr.msk.f32.mxu1 %vm537_vm0, %v536_v9 }
   0x8   :  { %131 = vmatprep.mubr.f32.mxu0 %v27_v26  ;;  %v139_v28 = vld [vmem:[%s786_s3 + $0x8] sm:$0xff]  ;;  %v141_v32 = vld [vmem:[%s786_s3 + $0x18] sm:$0xff]  ;;  %v36_v34 = vld [vmem:[%s784_s1 + $0x40] sm:$0xff] }
   0x9   :  { %471 = vmatpush3.bf16.msra.mxu0 %v470_v14  ;;  %v497_v30 = vpack.c.bf16 %v139_v28, %v138_v27  ;;  %v37_v35 = vld [vmem:[%s784_s1 + $0x48] sm:$0xff]  ;;  %v54_v36 = vld [vmem:[%s784_s1 + $0xd0] sm:$0xff]  ;;  %v55_v37 = vld [vmem:[%s784_s1 + $0xd8] sm:$0xff]  ;;  %v500_v38 = vpack.c.bf16 %v141_v32, %v140_v31 }
   0xa   :  { %473 = vmatprep.subr.bf16.mxu0 %v472_v15  ;;  %v142_v39 = vld [vmem:[%s786_s3 + $0x20] sm:$0xff]  ;;  %v143_v40 = vld [vmem:[%s786_s3 + $0x28] sm:$0xff]  ;;  %v482_v41 = vpack.c.bf16 %v37_v35, %v36_v34  ;;  %v484_v42 = vpack.c.bf16 %v55_v37, %v54_v36  ;;  %v38_v43 = vld [vmem:[%s784_s1 + $0x50] sm:$0xff] }
   0xb   :  { %498 = vmatpush3.bf16.msra.mxu1 %v497_v30  ;;  %v39_v44 = vld [vmem:[%s784_s1 + $0x58] sm:$0xff]  ;;  %v56_v45 = vld [vmem:[%s784_s1 + $0xe0] sm:$0xff]  ;;  %v57_v46 = vld [vmem:[%s784_s1 + $0xe8] sm:$0xff]  ;;  %v503_v47 = vpack.c.bf16 %v143_v40, %v142_v39 }
   0xc   :  { %499 = vmatprep.subr.bf16.mxu1 %v535_v3  ;;  %v144_v48 = vld [vmem:[%s786_s3 + $0x30] sm:$0xff]  ;;  %v145_v49 = vld [vmem:[%s786_s3 + $0x38] sm:$0xff]  ;;  %v486_v50 = vpack.c.bf16 %v39_v44, %v38_v43  ;;  %v488_v51 = vpack.c.bf16 %v57_v46, %v56_v45  ;;  %v40_v52 = vld [vmem:[%s784_s1 + $0x60] sm:$0xff] }
   0xd   :  { %475 = vmatpush3.bf16.msra.mxu0 %v474_v20  ;;  %v41_v53 = vld [vmem:[%s784_s1 + $0x68] sm:$0xff]  ;;  %v58_v54 = vld [vmem:[%s784_s1 + $0xf0] sm:$0xff]  ;;  %v59_v55 = vld [vmem:[%s784_s1 + $0xf8] sm:$0xff]  ;;  %v506_v56 = vpack.c.bf16 %v145_v49, %v144_v48 }
   0xe   :  { %477 = vmatprep.subr.bf16.mxu0 %v476_v21  ;;  %v146_v57 = vld [vmem:[%s786_s3 + $0x40] sm:$0xff]  ;;  %v147_v58 = vld [vmem:[%s786_s3 + $0x48] sm:$0xff]  ;;  %v490_v59 = vpack.c.bf16 %v41_v53, %v40_v52  ;;  %v492_v60 = vpack.c.bf16 %v59_v55, %v58_v54  ;;  %v42_v61 = vld [vmem:[%s784_s1 + $0x70] sm:$0xff] }
   0xf   :  { %501 = vmatpush3.bf16.msra.mxu1 %v500_v38  ;;  %v43_v62 = vld [vmem:[%s784_s1 + $0x78] sm:$0xff]  ;;  %v509_v63 = vpack.c.bf16 %v147_v58, %v146_v57  ;;  %v148_v0 = vld [vmem:[%s786_s3 + $0x50] sm:$0xff]  ;;  %v26_v5 = vld [vmem:[%s785_s0] sm:$0xff] }
  0x10   :  { %502 = vmatprep.subr.bf16.mxu1 %v535_v3  ;;  %v149_v1 = vld [vmem:[%s786_s3 + $0x58] sm:$0xff]  ;;  %v494_v2 = vpack.c.bf16 %v43_v62, %v42_v61  ;;  %v150_v6 = vld [vmem:[%s786_s3 + $0x60] sm:$0xff]  ;;  %v151_v7 = vld [vmem:[%s786_s3 + $0x68] sm:$0xff] }
  0x11   :  { %479 = vmatpush3.bf16.msra.mxu0 %v478_v29  ;;  %v512_v4 = vpack.c.bf16 %v149_v1, %v148_v0  ;;  %v515_v8 = vpack.c.bf16 %v151_v7, %v150_v6  ;;  %v152_v10 = vld [vmem:[%s786_s3 + $0x70] sm:$0xff]  ;;  %v337_v12 = vld [vmem:[%s787_s2] ss:$0 sm:$0xff]  ;;  %v236_v16 = vld [vmem:[%s788_s5 + $0x8] sm:$0xff] }
  0x12   :  { %481 = vmatprep.subr.bf16.mxu0 %v480_v33  ;;  %v235_v15 = vld [vmem:[%s788_s5] sm:$0xff]  ;;  %v237_v20 = vld [vmem:[%s788_s5 + $0x10] sm:$0xff]  ;;  %v238_v21 = vld [vmem:[%s788_s5 + $0x18] sm:$0xff] }
  0x13   :  { %504 = vmatpush3.bf16.msra.mxu1 %v503_v47  ;;  %v518_v18 = vpack.c.bf16 %v236_v16, %v235_v15  ;;  %v521_v22 = vpack.c.bf16 %v238_v21, %v237_v20  ;;  %v239_v23 = vld [vmem:[%s788_s5 + $0x20] sm:$0xff]  ;;  %v240_v24 = vld [vmem:[%s788_s5 + $0x28] sm:$0xff]  ;;  %v241_v26 = vld [vmem:[%s788_s5 + $0x30] sm:$0xff] }
  0x14   :  { %505 = vmatprep.subr.bf16.mxu1 %v535_v3  ;;  %v524_v25 = vpack.c.bf16 %v240_v24, %v239_v23  ;;  %v242_v27 = vld [vmem:[%s788_s5 + $0x38] sm:$0xff]  ;;  %v243_v29 = vld [vmem:[%s788_s5 + $0x40] sm:$0xff]  ;;  %v244_v30 = vld [vmem:[%s788_s5 + $0x48] sm:$0xff] }
  0x15   :  { %483 = vmatpush3.bf16.msra.mxu0 %v482_v41  ;;  %v527_v28 = vpack.c.bf16 %v242_v27, %v241_v26  ;;  %v530_v31 = vpack.c.bf16 %v244_v30, %v243_v29  ;;  %v245_v32 = vld [vmem:[%s788_s5 + $0x50] sm:$0xf]  ;;  %v340_v37 = vld [vmem:[%s790_s6] ss:$0 sm:$0xff] }
  0x16   :  { %485 = vmatprep.subr.bf16.mxu0 %v484_v42 }
  0x17   :  { %507 = vmatpush3.bf16.msra.mxu1 %v506_v56 }
  0x18   :  { %508 = vmatprep.subr.bf16.mxu1 %v535_v3 }
  0x19   :  { %487 = vmatpush3.bf16.msra.mxu0 %v486_v50 }
  0x1a   :  { %489 = vmatprep.subr.bf16.mxu0 %v488_v51 }
  0x1b   :  { %510 = vmatpush3.bf16.msra.mxu1 %v509_v63 }
  0x1c   :  { %511 = vmatprep.subr.bf16.mxu1 %v535_v3 }
  0x1d   :  { %491 = vmatpush3.bf16.msra.mxu0 %v490_v59 }
  0x1e   :  { %493 = vmatprep.subr.bf16.mxu0 %v492_v60 }
  0x1f   :  { %513 = vmatpush3.bf16.msra.mxu1 %v512_v4 }
  0x20   :  { %514 = vmatprep.subr.bf16.mxu1 %v535_v3 }
  0x21   :  { %495 = vmatpush3.bf16.msra.mxu0 %v494_v2 }
  0x23   :  { %516 = vmatpush3.bf16.msra.mxu1 %v515_v8 }
  0x24   :  { %132 = vmatmul.mubr.f32.vlgmr.msra.gmra.mrb[0].mxu0 %v26_v5  ;;  %434 = vmatprep.subr.mxu1 %v536_v9 }
  0x27   :  { %435 = vmatpush3.msra.mxu1 %v152_v10 }
  0x28   :  { %517 = vmatprep.subr.bf16.mxu1 %v535_v3 }
  0xf7   :  { %v375_v11 = vpop.f32.mrb[0].mxu0 }
  0xf8   :  { %v376_v13 = vpop.f32.mrb[1].mxu0 }
  0xf9   :  { %v377_v14 = vadd.f32 %v376_v13, %v375_v11 }
  0xfb   :  { %v134_v17 = vadd.f32 %v377_v14, %v337_v12 }
  0xfd   :  { %v137_v19 = vmax.f32 %v134_v17, 0.0 }
  0xff   :  { %437 = vmatmul.mubr.msk.f32.vlgmr.msra.gmra.mrb[0].mxu1 %vm160_vm1, %v137_v19 }
 0x100   :  { %519 = vmatpush3.bf16.msra.mxu1 %v518_v18  ;;  %461 = vmatprep.mubr.msk.f32.mxu1 %vm537_vm0, %v536_v9 }
 0x101   :  { %520 = vmatprep.subr.bf16.mxu1 %v535_v3 }
 0x104   :  { %522 = vmatpush3.bf16.msra.mxu1 %v521_v22 }
 0x105   :  { %523 = vmatprep.subr.bf16.mxu1 %v535_v3 }
 0x108   :  { %525 = vmatpush3.bf16.msra.mxu1 %v524_v25 }
 0x109   :  { %526 = vmatprep.subr.bf16.mxu1 %v535_v3 }
 0x10c   :  { %528 = vmatpush3.bf16.msra.mxu1 %v527_v28 }
 0x10d   :  { %529 = vmatprep.subr.bf16.mxu1 %v535_v3  ;;  %v338_v3 = vld [vmem:[%s789_s4] ss:$0 sm:$0xff] }
 0x110   :  { %531 = vmatpush3.bf16.msra.mxu1 %v530_v31 }
 0x111   :  { %459 = vmatprep.subr.mxu1 %v536_v9 }
 0x114   :  { %460 = vmatpush3.msk.msra.mxu1 %vm257_vm2, %v245_v32 }
 0x1d2   :  { %v230_v33 = vpop.f32.mrb[0].mxu1 }
 0x1d3   :  { %v231_v34 = vadd.f32 %v338_v3, %v230_v33  ;;  %v438_v35 = vpop.f32.mrb[1].mxu1 }
 0x1d5   :  { %v234_v36 = vmax.f32 %v231_v34, 0.0 }
 0x1d7   :  { %462 = vmatmul.mubr.msk.f32.vlgmr.msra.gmra.mrb[2].mxu1 %vm253_vm3, %v234_v36 }
 0x2aa   :  { %v327_v38 = vpop.f32.mrb[2].mxu1 }
 0x2ab   :  { %v328_v39 = vadd.f32 %v340_v37, %v327_v38  ;;  %v463_v40 = vpop.f32.mrb[3].mxu1 }
 0x2ad   :  { %332 = vst.msk [vmem:[%s791_s7] sm:$0xff] %vm331_vm4, %v328_v39 }

</bundles_post_ra>
